<compile_context>
chip_gen: v7x
topology: tpu7x:2x2x1
jax: 0.10.0
libtpu: 0.0.40
codegen_flags: <defaults>
</compile_context>

<pallas_src>
import jax
import jax.numpy as jnp
import numpy as np
from jax import lax
from jax.experimental import pallas as pl
from jax.experimental.pallas import tpu as pltpu


# ---------------------------------------------------------------------------
# Pallas kernel
# ---------------------------------------------------------------------------
def crf_marginals_kernel(em_ref, mask_ref, ablk_ref, vecs_ref, out_ref, beta_ref):
    # em_ref   : (S, T, Bt) f32   emissions, time-major, batch on lanes
    # mask_ref : (S, 1, Bt) f32   1 = keep, 0 = padding
    # ablk_ref : (2T, 2T)   f32   block-diag [exp(trans.T - colmax) | exp(trans - rowmax)]
    # vecs_ref : (T, 4)     f32   columns = [start, end, colmax(trans), rowmax(trans)]
    # out_ref  : (S, T, Bt)       marginals; doubles as alpha storage during recursion
    # beta_ref : (S, T, Bt) f32   VMEM scratch for beta
    S, T, Bt = em_ref.shape
    T2 = 2 * T

    a_blk = ablk_ref[...]                                   # (2T, 2T)
    start = vecs_ref[:, 0:1]                                # (T, 1)
    end = vecs_ref[:, 1:2]                                  # (T, 1)
    # Stabilizer maxes for fwd (col-max) / bwd (row-max), laid out to match the
    # fused matmul output rows.  Lane-broadcast hoisted out of the loop
    # (broadcast_in_dim is not CSE'd by JAX).
    cmax_cat = jnp.broadcast_to(
        jnp.concatenate([vecs_ref[:, 2:3], vecs_ref[:, 3:4]], axis=0), (T2, Bt))

    # ---- init ----
    alpha0 = em_ref[0] + start                              # alpha[0]   (T, Bt)
    beta_last = jnp.broadcast_to(end, (T, Bt))              # beta[S-1]
    out_ref[0] = alpha0                                     # alpha aliased into out
    beta_ref[S - 1] = beta_last

    # ---- interleaved forward / backward recursion (serial log-space chain) ----
    def body(t, carry):
        alpha_prev, beta_next = carry                       # (T, Bt) each
        j = S - t

        em_t = em_ref[t]
        em_j = em_ref[j]
        keep_f = mask_ref[t] > 0.0                          # (1, Bt)
        keep_b = mask_ref[j] > 0.0

        y = beta_next + em_j                                # backward operand
        m_f = jnp.maximum(jnp.max(alpha_prev, axis=0, keepdims=True), -1e30)  # (1, Bt)
        m_b = jnp.maximum(jnp.max(y, axis=0, keepdims=True), -1e30)

        # One MXU push for both directions via the block-diagonal operand.
        p = jnp.concatenate([jnp.exp(alpha_prev - m_f), jnp.exp(y - m_b)], axis=0)  # (2T, Bt)
        s = jnp.dot(a_blk, p, preferred_element_type=jnp.float32)                   # (2T, Bt)
        lse = cmax_cat + jnp.log(s)

        # forward: alpha[t][k,b] = lse_j(alpha[t-1][j,b] + trans[j,k]) + em[t][k,b]
        a_new = lse[:T] + m_f + em_t
        a_new = jnp.where(keep_f, a_new, alpha_prev)
        out_ref[t] = a_new

        # backward: beta[j-1][j',b] = lse_k(beta[j][k,b] + em[j][k,b] + trans[j',k])
        b_new = lse[T:] + m_b
        b_new = jnp.where(keep_b, b_new, beta_next)
        beta_ref[j - 1] = b_new

        return a_new, b_new

    alpha_last, _ = lax.fori_loop(1, S, body, (alpha0, beta_last))

    # ---- partition function z[b] = logsumexp_k(alpha[S-1][k,b] + end[k]) ----
    a_end = alpha_last + end                                # (T, Bt)
    mz = jnp.maximum(jnp.max(a_end, axis=0, keepdims=True), -1e30)
    z = mz + jnp.log(jnp.sum(jnp.exp(a_end - mz), axis=0, keepdims=True))   # (1, Bt)

    # ---- marginals: fused full-slab epilogue (alpha already lives in out_ref) ----
    out_ref[...] = jnp.exp(out_ref[...] + beta_ref[...] - z[None])


# ---------------------------------------------------------------------------
# Wrapper
# ---------------------------------------------------------------------------
def _vmem_capacity_bytes():
    try:
        info = pltpu.get_tpu_info()
        cap = getattr(info, "vmem_capacity_bytes", None)
        if cap:
            return int(cap)
    except Exception:
        pass
    return 64 * 1024 * 1024   # safe default (v7x-sized)


def _pick_batch_tile(B, S, T, vmem_budget_bytes):
    # Per batch column (f32 bytes): em x2 (double-buffered) + out x2 + beta scratch
    # = 5 * S * T, plus mask x2 = 2 * S.
    per_col = (5 * T + 2) * S * 4
    bt_cap = max(128, (vmem_budget_bytes // max(per_col, 1)) // 128 * 128)
    # Prefer >= 2 grid steps when the batch is big enough (v7x has 2 TCs).
    half = ((B + 1) // 2 + 127) // 128 * 128
    return int(min(bt_cap, 512, max(128, half)))


def crf_marginal_probabilities(emissions, mask, start_transitions,
                               end_transitions, transitions, *, batch_tile=None):
    """emissions (B, S, T), mask (B, S) -> marginals (S, B, T) (matches PyTorch)."""
    B, S, T = emissions.shape
    if mask is None:
        mask = jnp.ones((B, S), dtype=jnp.uint8)

    # Per-generation VMEM budgeting (64 MiB on v7x, 128 MiB on v5e/v6e).
    vmem_cap = _vmem_capacity_bytes()
    vmem_limit = int(min(vmem_cap * 0.85, 110 * 1024 * 1024))
    tb = batch_tile if batch_tile is not None else _pick_batch_tile(
        B, S, T, int(vmem_limit * 0.85))
    b_pad = pl.cdiv(B, tb) * tb

    # Layout plumbing: time-major, tags on sublanes, batch on lanes (lane-dense).
    # TODO(synk): these transposes/pads are an extra HBM pass; fuse into the
    # upstream producer (or allow_input_fusion) in a production pipeline.
    em = jnp.transpose(emissions.astype(jnp.float32), (1, 2, 0))          # (S, T, B)
    mk = jnp.transpose(mask.astype(jnp.float32))[:, None, :]              # (S, 1, B)
    if b_pad != B:
        em = jnp.pad(em, ((0, 0), (0, 0), (0, b_pad - B)))
        mk = jnp.pad(mk, ((0, 0), (0, 0), (0, b_pad - B)))

    # Step-invariant exp-space MXU operands, hoisted out of the kernel.
    trans = transitions.astype(jnp.float32)
    start = start_transitions.astype(jnp.float32).reshape(T, 1)
    end = end_transitions.astype(jnp.float32).reshape(T, 1)
    cmax_f = jnp.maximum(jnp.max(trans, axis=0), -1e30).reshape(T, 1)     # col-max (by next tag)
    rmax_b = jnp.maximum(jnp.max(trans, axis=1), -1e30).reshape(T, 1)     # row-max (by prev tag)
    a_f = jnp.exp(trans.T - cmax_f)                                       # (T, T) [k, j]
    a_b = jnp.exp(trans - rmax_b)                                         # (T, T) [j, k]
    zeros = jnp.zeros((T, T), jnp.float32)
    ablk = jnp.concatenate([jnp.concatenate([a_f, zeros], axis=1),
                            jnp.concatenate([zeros, a_b], axis=1)], axis=0)  # (2T, 2T)
    vecs = jnp.concatenate([start, end, cmax_f, rmax_b], axis=1)          # (T, 4)

    grid = (b_pad // tb,)
    grid_spec = pltpu.PrefetchScalarGridSpec(
        num_scalar_prefetch=0,
        grid=grid,
        in_specs=[
            pl.BlockSpec((S, T, tb), lambda i: (0, 0, i)),    # emissions
            pl.BlockSpec((S, 1, tb), lambda i: (0, 0, i)),    # mask
            pl.BlockSpec((2 * T, 2 * T), lambda i: (0, 0)),   # block-diag exp-space trans
            pl.BlockSpec((T, 4), lambda i: (0, 0)),           # [start|end|cmax_f|rmax_b]
        ],
        out_specs=pl.BlockSpec((S, T, tb), lambda i: (0, 0, i)),
        scratch_shapes=[pltpu.VMEM((S, T, tb), jnp.float32)],  # beta (alpha aliased to out)
    )

    out = pl.pallas_call(
        crf_marginals_kernel,
        out_shape=jax.ShapeDtypeStruct((S, T, b_pad), jnp.float32),
        grid_spec=grid_spec,
        compiler_params=pltpu.CompilerParams(
            dimension_semantics=("parallel",),
            vmem_limit_bytes=vmem_limit,
        ),
    )(em, mk, ablk, vecs)

    # Back to the PyTorch output layout (S, B, T).
    return jnp.transpose(out[:, :, :B], (0, 2, 1))


# ---------------------------------------------------------------------------
# Pure-JAX reference (mirrors the PyTorch code) for correctness check
# ---------------------------------------------------------------------------
def _ref_forward_algorithm(emissions, mask, start, end, trans, reverse):
    B, S, T = emissions.shape
    em_t = jnp.transpose(emissions, (1, 0, 2))
    mask_t = jnp.transpose(mask.astype(jnp.float32))
    if reverse:
        seq_iter = range(S - 1, 0, -1)
        log_proba = [jnp.broadcast_to(end[None, :], (B, T))]
    else:
        seq_iter = range(1, S)
        log_proba = [em_t[0] + start[None, :]]
    for i in seq_iter:
        lp = log_proba[-1]
        if reverse:
            inner = lp[:, :, None] + trans.T[None, :, :] + em_t[i][:, :, None]
        else:
            inner = lp[:, :, None] + trans[None, :, :] + em_t[i][:, None, :]
        lse = jax.scipy.special.logsumexp(inner, axis=1)
        m = mask_t[i][:, None]
        log_proba.append(lse * m + lp * (1.0 - m))
    if reverse:
        log_proba.reverse()
    return jnp.stack(log_proba)


def _ref_marginals(emissions, mask, start, end, trans):
    alpha = _ref_forward_algorithm(emissions, mask, start, end, trans, False)
    beta = _ref_forward_algorithm(emissions, mask, start, end, trans, True)
    z = jax.scipy.special.logsumexp(alpha[-1] + end, axis=1)
    return jnp.exp(alpha + beta - z[None, :, None])


# ---------------------------------------------------------------------------
if __name__ == "__main__":
    B, S, T = 16, 8, 16   # batch, sequence_length, num_tags (padded to one 128-wide tile)

    key = jax.random.PRNGKey(0)
    k_em, k_start, k_end, k_trans = jax.random.split(key, 4)

    # nn.Parameter(torch.randn(...)) analogues; padding_idx=None -> no IMPOSSIBLE_SCORE.
    start_transitions = jax.random.normal(k_start, (T,), dtype=jnp.float32)
    end_transitions = jax.random.normal(k_end, (T,), dtype=jnp.float32)
    transitions = jax.random.normal(k_trans, (T, T), dtype=jnp.float32)

    emissions = jax.random.normal(k_em, (B, S, T), dtype=jnp.float32)

    # Mask with padding at the tail of a few batch rows (ByteTensor analogue).
    mask_np = np.ones((B, S), dtype=np.uint8)
    mask_np[1, 6:] = 0
    mask_np[3, 5:] = 0
    mask_np[7, 2:] = 0
    mask = jnp.asarray(mask_np)

    out = crf_marginal_probabilities(emissions, mask, start_transitions,
                                     end_transitions, transitions)
    out = jax.block_until_ready(out)

    ref = _ref_marginals(emissions, mask, start_transitions,
                         end_transitions, transitions)
    np.testing.assert_allclose(np.asarray(out), np.asarray(ref),
                               rtol=1e-4, atol=1e-5)

    # TODO(synk): viterbi_decode / restricted_viterbi_decode need host-side ragged
    # backtracking (Python lists of per-example tag paths) and are not kernelized.
    print("KERNEL_OK")
</pallas_src>

<mosaic_0001>
module attributes {stable_mosaic.version = 11 : i64} {
  func.func @crf_marginals_kernel(%arg0: i32, %arg1: memref<8x16x128xf32, #tpu.memory_space<vmem>>, %arg2: memref<8x1x128xf32, #tpu.memory_space<vmem>>, %arg3: memref<32x32xf32, #tpu.memory_space<vmem>>, %arg4: memref<16x4xf32, #tpu.memory_space<vmem>>, %arg5: memref<8x16x128xf32, #tpu.memory_space<vmem>>, %arg6: memref<8x16x128xf32, #tpu.memory_space<vmem>>) attributes {dimension_semantics = [#tpu.dimension_semantics<parallel>], iteration_bounds = array<i64: 1>, scalar_prefetch = 0 : i64, scratch_operands = 1 : i64, tpu.core_type = #tpu.core_type<tc>, window_params = [{transform_indices = @transform_0, window_bounds = array<i64: 8, 16, 128>}, {transform_indices = @transform_1, window_bounds = array<i64: 8, 1, 128>}, {pipeline_mode = #tpu.pipeline_mode<synchronous>, transform_indices = @transform_2, window_bounds = array<i64: 32, 32>}, {pipeline_mode = #tpu.pipeline_mode<synchronous>, transform_indices = @transform_3, window_bounds = array<i64: 16, 4>}, {transform_indices = @transform_4, window_bounds = array<i64: 8, 16, 128>}]} {
    %c0 = arith.constant 0 : index
    %c0_0 = arith.constant 0 : index
    %0 = vector.load %arg3[%c0, %c0_0] : memref<32x32xf32, #tpu.memory_space<vmem>>, vector<32x32xf32>
    %c0_1 = arith.constant 0 : index
    %c0_2 = arith.constant 0 : index
    %1 = vector.load %arg4[%c0_1, %c0_2] : memref<16x4xf32, #tpu.memory_space<vmem>>, vector<16x1xf32>
    %c0_3 = arith.constant 0 : index
    %c1 = arith.constant 1 : index
    %2 = vector.load %arg4[%c0_3, %c1] : memref<16x4xf32, #tpu.memory_space<vmem>>, vector<16x1xf32>
    %c0_4 = arith.constant 0 : index
    %c2 = arith.constant 2 : index
    %3 = vector.load %arg4[%c0_4, %c2] : memref<16x4xf32, #tpu.memory_space<vmem>>, vector<16x1xf32>
    %c0_5 = arith.constant 0 : index
    %c3 = arith.constant 3 : index
    %4 = vector.load %arg4[%c0_5, %c3] : memref<16x4xf32, #tpu.memory_space<vmem>>, vector<16x1xf32>
    %5 = tpu.concatenate %3, %4 in 0 : vector<16x1xf32>, vector<16x1xf32> -> vector<32x1xf32>
    %6 = vector.shape_cast %5 : vector<32x1xf32> to vector<32x1xf32>
    %7 = vector.broadcast %6 : vector<32x1xf32> to vector<32x128xf32>
    %c0_6 = arith.constant 0 : index
    %c0_7 = arith.constant 0 : index
    %c0_8 = arith.constant 0 : index
    %8 = vector.load %arg1[%c0_6, %c0_7, %c0_8] : memref<8x16x128xf32, #tpu.memory_space<vmem>>, vector<1x16x128xf32>
    %9 = vector.shape_cast %8 : vector<1x16x128xf32> to vector<16x128xf32>
    %10 = vector.broadcast %1 : vector<16x1xf32> to vector<16x128xf32>
    %11 = arith.addf %9, %10 : vector<16x128xf32>
    %12 = vector.shape_cast %2 : vector<16x1xf32> to vector<16x1xf32>
    %13 = vector.broadcast %12 : vector<16x1xf32> to vector<16x128xf32>
    %c0_9 = arith.constant 0 : index
    %c0_10 = arith.constant 0 : index
    %c0_11 = arith.constant 0 : index
    %14 = vector.load %arg5[%c0_9, %c0_10, %c0_11] : memref<8x16x128xf32, #tpu.memory_space<vmem>>, vector<1x16x128xf32>
    %15 = vector.shape_cast %14 : vector<1x16x128xf32> to vector<16x128xf32>
    %16 = vector.shape_cast %11 : vector<16x128xf32> to vector<1x16x128xf32>
    tpu.vector_store %arg5[%c0_9, %c0_10, %c0_11], %16 {strides = array<i32>} : memref<8x16x128xf32, #tpu.memory_space<vmem>>, vector<1x16x128xf32>,
    %c7 = arith.constant 7 : index
    %c0_12 = arith.constant 0 : index
    %c0_13 = arith.constant 0 : index
    %17 = vector.load %arg6[%c7, %c0_12, %c0_13] : memref<8x16x128xf32, #tpu.memory_space<vmem>>, vector<1x16x128xf32>
    %18 = vector.shape_cast %17 : vector<1x16x128xf32> to vector<16x128xf32>
    %19 = vector.shape_cast %13 : vector<16x128xf32> to vector<1x16x128xf32>
    tpu.vector_store %arg6[%c7, %c0_12, %c0_13], %19 {strides = array<i32>} : memref<8x16x128xf32, #tpu.memory_space<vmem>>, vector<1x16x128xf32>,
    %c1_i32 = arith.constant 1 : i32
    %c7_i32 = arith.constant 7 : i32
    %20 = arith.addi %c1_i32, %c7_i32 : i32
    %c1_i32_14 = arith.constant 1 : i32
    %21:2 = scf.for %arg7 = %c1_i32 to %20 step %c1_i32_14 iter_args(%arg8 = %11, %arg9 = %13) -> (vector<16x128xf32>, vector<16x128xf32>)  : i32 {
      %c8_i32 = arith.constant 8 : i32
      %43 = arith.subi %c8_i32, %arg7 : i32
      %44 = arith.index_cast %arg7 : i32 to index
      %c0_27 = arith.constant 0 : index
      %c0_28 = arith.constant 0 : index
      %45 = vector.load %arg1[%44, %c0_27, %c0_28] : memref<8x16x128xf32, #tpu.memory_space<vmem>>, vector<1x16x128xf32>
      %46 = vector.shape_cast %45 : vector<1x16x128xf32> to vector<16x128xf32>
      %47 = arith.index_cast %43 : i32 to index
      %c0_29 = arith.constant 0 : index
      %c0_30 = arith.constant 0 : index
      %48 = vector.load %arg1[%47, %c0_29, %c0_30] : memref<8x16x128xf32, #tpu.memory_space<vmem>>, vector<1x16x128xf32>
      %49 = vector.shape_cast %48 : vector<1x16x128xf32> to vector<16x128xf32>
      %50 = arith.index_cast %arg7 : i32 to index
      %c0_31 = arith.constant 0 : index
      %c0_32 = arith.constant 0 : index
      %51 = vector.load %arg2[%50, %c0_31, %c0_32] : memref<8x1x128xf32, #tpu.memory_space<vmem>>, vector<1x1x128xf32>
      %52 = vector.shape_cast %51 : vector<1x1x128xf32> to vector<1x128xf32>
      %cst_33 = arith.constant 0.000000e+00 : f32
      %53 = vector.broadcast %cst_33 : f32 to vector<1x128xf32>
      %54 = arith.cmpf ogt, %52, %53 : vector<1x128xf32>
      %55 = arith.index_cast %43 : i32 to index
      %c0_34 = arith.constant 0 : index
      %c0_35 = arith.constant 0 : index
      %56 = vector.load %arg2[%55, %c0_34, %c0_35] : memref<8x1x128xf32, #tpu.memory_space<vmem>>, vector<1x1x128xf32>
      %57 = vector.shape_cast %56 : vector<1x1x128xf32> to vector<1x128xf32>
      %cst_36 = arith.constant 0.000000e+00 : f32
      %58 = vector.broadcast %cst_36 : f32 to vector<1x128xf32>
      %59 = arith.cmpf ogt, %57, %58 : vector<1x128xf32>
      %60 = arith.addf %arg9, %49 : vector<16x128xf32>
      %cst_37 = arith.constant dense<0xFF800000> : vector<128xf32>
      %61 = vector.multi_reduction <maximumf>, %arg8, %cst_37 [0] : vector<16x128xf32> to vector<128xf32>
      %62 = vector.shape_cast %61 : vector<128xf32> to vector<1x128xf32>
      %cst_38 = arith.constant -1.000000e+30 : f32
      %63 = vector.broadcast %cst_38 : f32 to vector<1x128xf32>
      %64 = arith.maximumf %62, %63 : vector<1x128xf32>
      %cst_39 = arith.constant dense<0xFF800000> : vector<128xf32>
      %65 = vector.multi_reduction <maximumf>, %60, %cst_39 [0] : vector<16x128xf32> to vector<128xf32>
      %66 = vector.shape_cast %65 : vector<128xf32> to vector<1x128xf32>
      %cst_40 = arith.constant -1.000000e+30 : f32
      %67 = vector.broadcast %cst_40 : f32 to vector<1x128xf32>
      %68 = arith.maximumf %66, %67 : vector<1x128xf32>
      %69 = vector.broadcast %64 : vector<1x128xf32> to vector<16x128xf32>
      %70 = arith.subf %arg8, %69 : vector<16x128xf32>
      %71 = math.exp %70 : vector<16x128xf32>
      %72 = vector.broadcast %68 : vector<1x128xf32> to vector<16x128xf32>
      %73 = arith.subf %60, %72 : vector<16x128xf32>
      %74 = math.exp %73 : vector<16x128xf32>
      %75 = tpu.concatenate %71, %74 in 0 : vector<16x128xf32>, vector<16x128xf32> -> vector<32x128xf32>
      %cst_41 = arith.constant dense<0.000000e+00> : vector<32x128xf32>
      %76 = tpu.matmul %0, %75, %cst_41 {dimension_numbers = #tpu.dot_dimension_numbers<[1], [0], [0], [1], [0, 0, 1, 1], [], []>} : vector<32x32xf32>, vector<32x128xf32>, vector<32x128xf32> -> vector<32x128xf32>
      %77 = math.log %76 : vector<32x128xf32>
      %78 = arith.addf %7, %77 : vector<32x128xf32>
      %79 = vector.extract_strided_slice %78 {offsets = [0, 0], sizes = [16, 128], strides = [1, 1]} : vector<32x128xf32> to vector<16x128xf32>
      %80 = vector.broadcast %64 : vector<1x128xf32> to vector<16x128xf32>
      %81 = arith.addf %79, %80 : vector<16x128xf32>
      %82 = arith.addf %81, %46 : vector<16x128xf32>
      %83 = vector.shape_cast %54 : vector<1x128xi1> to vector<1x128xi1>
      %84 = vector.broadcast %83 : vector<1x128xi1> to vector<16x128xi1>
      %85 = arith.select %84, %82, %arg8 : vector<16x128xi1>, vector<16x128xf32>
      %86 = arith.index_cast %arg7 : i32 to index
      %c0_42 = arith.constant 0 : index
      %c0_43 = arith.constant 0 : index
      %87 = vector.load %arg5[%86, %c0_42, %c0_43] : memref<8x16x128xf32, #tpu.memory_space<vmem>>, vector<1x16x128xf32>
      %88 = vector.shape_cast %87 : vector<1x16x128xf32> to vector<16x128xf32>
      %89 = vector.shape_cast %85 : vector<16x128xf32> to vector<1x16x128xf32>
      tpu.vector_store %arg5[%86, %c0_42, %c0_43], %89 {strides = array<i32>} : memref<8x16x128xf32, #tpu.memory_space<vmem>>, vector<1x16x128xf32>,
      %90 = vector.extract_strided_slice %78 {offsets = [16, 0], sizes = [16, 128], strides = [1, 1]} : vector<32x128xf32> to vector<16x128xf32>
      %91 = vector.broadcast %68 : vector<1x128xf32> to vector<16x128xf32>
      %92 = arith.addf %90, %91 : vector<16x128xf32>
      %93 = vector.shape_cast %59 : vector<1x128xi1> to vector<1x128xi1>
      %94 = vector.broadcast %93 : vector<1x128xi1> to vector<16x128xi1>
      %95 = arith.select %94, %92, %arg9 : vector<16x128xi1>, vector<16x128xf32>
      %c1_i32_44 = arith.constant 1 : i32
      %96 = arith.subi %43, %c1_i32_44 : i32
      %97 = arith.index_cast %96 : i32 to index
      %c0_45 = arith.constant 0 : index
      %c0_46 = arith.constant 0 : index
      %98 = vector.load %arg6[%97, %c0_45, %c0_46] : memref<8x16x128xf32, #tpu.memory_space<vmem>>, vector<1x16x128xf32>
      %99 = vector.shape_cast %98 : vector<1x16x128xf32> to vector<16x128xf32>
      %100 = vector.shape_cast %95 : vector<16x128xf32> to vector<1x16x128xf32>
      tpu.vector_store %arg6[%97, %c0_45, %c0_46], %100 {strides = array<i32>} : memref<8x16x128xf32, #tpu.memory_space<vmem>>, vector<1x16x128xf32>,
      scf.yield %85, %95 : vector<16x128xf32>, vector<16x128xf32>
    }
    %c7_i32_15 = arith.constant 7 : i32
    %22 = vector.broadcast %2 : vector<16x1xf32> to vector<16x128xf32>
    %23 = arith.addf %21#0, %22 : vector<16x128xf32>
    %cst = arith.constant dense<0xFF800000> : vector<128xf32>
    %24 = vector.multi_reduction <maximumf>, %23, %cst [0] : vector<16x128xf32> to vector<128xf32>
    %25 = vector.shape_cast %24 : vector<128xf32> to vector<1x128xf32>
    %cst_16 = arith.constant -1.000000e+30 : f32
    %26 = vector.broadcast %cst_16 : f32 to vector<1x128xf32>
    %27 = arith.maximumf %25, %26 : vector<1x128xf32>
    %28 = vector.broadcast %27 : vector<1x128xf32> to vector<16x128xf32>
    %29 = arith.subf %23, %28 : vector<16x128xf32>
    %30 = math.exp %29 : vector<16x128xf32>
    %cst_17 = arith.constant dense<0.000000e+00> : vector<128xf32>
    %31 = vector.multi_reduction <add>, %30, %cst_17 [0] : vector<16x128xf32> to vector<128xf32>
    %32 = vector.shape_cast %31 : vector<128xf32> to vector<1x128xf32>
    %33 = math.log %32 : vector<1x128xf32>
    %34 = arith.addf %27, %33 : vector<1x128xf32>
    %c0_18 = arith.constant 0 : index
    %c0_19 = arith.constant 0 : index
    %c0_20 = arith.constant 0 : index
    %35 = vector.load %arg5[%c0_18, %c0_19, %c0_20] : memref<8x16x128xf32, #tpu.memory_space<vmem>>, vector<8x16x128xf32>
    %c0_21 = arith.constant 0 : index
    %c0_22 = arith.constant 0 : index
    %c0_23 = arith.constant 0 : index
    %36 = vector.load %arg6[%c0_21, %c0_22, %c0_23] : memref<8x16x128xf32, #tpu.memory_space<vmem>>, vector<8x16x128xf32>
    %37 = arith.addf %35, %36 : vector<8x16x128xf32>
    %38 = vector.shape_cast %34 : vector<1x128xf32> to vector<1x1x128xf32>
    %39 = vector.broadcast %38 : vector<1x1x128xf32> to vector<8x16x128xf32>
    %40 = arith.subf %37, %39 : vector<8x16x128xf32>
    %41 = math.exp %40 : vector<8x16x128xf32>
    %c0_24 = arith.constant 0 : index
    %c0_25 = arith.constant 0 : index
    %c0_26 = arith.constant 0 : index
    %42 = vector.load %arg5[%c0_24, %c0_25, %c0_26] : memref<8x16x128xf32, #tpu.memory_space<vmem>>, vector<8x16x128xf32>
    tpu.vector_store %arg5[%c0_24, %c0_25, %c0_26], %41 {strides = array<i32>} : memref<8x16x128xf32, #tpu.memory_space<vmem>>, vector<8x16x128xf32>,
    return
  }
  func.func @transform_0(%arg0: i32) -> (i32, i32, i32) {
    %c0_i32 = arith.constant 0 : i32
    %c0_i32_0 = arith.constant 0 : i32
    %c0_i32_1 = arith.constant 0 : i32
    return %c0_i32, %c0_i32_0, %arg0 : i32, i32, i32
  }
  func.func @transform_1(%arg0: i32) -> (i32, i32, i32) {
    %c0_i32 = arith.constant 0 : i32
    %c0_i32_0 = arith.constant 0 : i32
    %c0_i32_1 = arith.constant 0 : i32
    return %c0_i32, %c0_i32_0, %arg0 : i32, i32, i32
  }
  func.func @transform_2(%arg0: i32) -> (i32, i32) {
    %c0_i32 = arith.constant 0 : i32
    %c0_i32_0 = arith.constant 0 : i32
    %c0_i32_1 = arith.constant 0 : i32
    return %c0_i32, %c0_i32_0 : i32, i32
  }
  func.func @transform_3(%arg0: i32) -> (i32, i32) {
    %c0_i32 = arith.constant 0 : i32
    %c0_i32_0 = arith.constant 0 : i32
    %c0_i32_1 = arith.constant 0 : i32
    return %c0_i32, %c0_i32_0 : i32, i32
  }
  func.func @transform_4(%arg0: i32) -> (i32, i32, i32) {
    %c0_i32 = arith.constant 0 : i32
    %c0_i32_0 = arith.constant 0 : i32
    %c0_i32_1 = arith.constant 0 : i32
    return %c0_i32, %c0_i32_0, %arg0 : i32, i32, i32
  }
}

</mosaic_0001>

<bundles_post_ra>
// kernel: tpu_custom_call.1
= control target key start
LH: loop header
LB: loop body
LE: loop exit
PB: predicated region body
PF: predicated region fallthrough
CT: control target
= control target key end

     0   :  { %9 = vsyncpa [#allocation4], 0  ;;  %s958_s0 = inlined_call_operand.hbm [shape: f32[8,16,128], index: 0, kind: input, shape index: {}]   ;;  %s959_s1 = inlined_call_operand.vmem [shape: f32[8,1,128], index: 1, kind: input, shape index: {}]   ;;  %s960_s2 = inlined_call_operand.hbm [shape: f32[32,32], index: 2, kind: input, shape index: {}]   ;;  %s961_s3 = inlined_call_operand.vmem [shape: f32[16,4], index: 3, kind: input, shape index: {}]   ;;  %s962_s4 = inlined_call_operand.hbm [shape: f32[8,16,128], index: 4, kind: output, shape index: {}]  }
   0x1   :  { %10 = vsyncpa [#allocation7], 0 }
   0x2   :  { %11 = vsyncpa [#allocation5], 0  ;;  %s740_s15 = smov [#allocation3]   ;;  %s628_s19 = scalar_lea.hbm %s958_s0, 2048 }
   0x3   :  { %s17_s16 = sshll.u32 %s740_s15, 4  ;;  %p629_p0 = scmp.ne.s32.totalorder %s958_s0, %s628_s19  ;;  %s18_s16 = int_to_ptr.vmem [resolvable:$true] %s17_s16 }
   0x4   :  { %p632_p1 = scmp.lt.u32.totalorder %s628_s19, %s958_s0 }
   0x6   :  { %p634_p2 = pnand %p632_p1, %p629_p0 }
   0x8   :  { %637 = shalt.err (!%p634_p2)
}
   0x9   :  { %s638_s24 = scalar_lea.vmem %s18_s16, 2048  ;;  %p643_p4 = scmp.lt.s32.totalorder %s18_s16, %s18_s16 }
   0xa   :  { %p639_p3 = scmp.ne.s32.totalorder %s18_s16, %s638_s24  ;;  %p644_p5 = scmp.lt.s32.totalorder %s638_s24, %s638_s24 }
   0xc   :  { %p645_p6 = por %p644_p5, %p643_p4 }
   0xe   :  { %p646_p7 = pnand %p645_p6, %p639_p3 }
  0x10   :  { %649 = shalt.err (!%p646_p7)
}
  0x11   :  { %s741_s25 = smov 128   ;;  %s742_s26 = smov 8  }
  0x12   :  { %23 = dma.hbm_to_vmem [thread:$0]  %s958_s0, 2048, %s18_s16, [#allocation4], %s741_s25, %s741_s25, %s742_s26  }
  0x13   :  { %s743_s29 = smov [#allocation6]   ;;  %s650_s7 = scalar_lea.hbm %s960_s2, 512 }
  0x14   :  { %s31_s30 = sshll.u32 %s743_s29, 4  ;;  %p651_p8 = scmp.ne.s32.totalorder %s960_s2, %s650_s7  ;;  %s32_s30 = int_to_ptr.vmem [resolvable:$true] %s31_s30 }
  0x15   :  { %p654_p9 = scmp.lt.u32.totalorder %s650_s7, %s960_s2 }
  0x17   :  { %p656_p10 = pnand %p654_p9, %p651_p8 }
  0x19   :  { %659 = shalt.err (!%p656_p10)
}
  0x1a   :  { %s660_s12 = scalar_lea.vmem %s32_s30, 512  ;;  %p665_p12 = scmp.lt.s32.totalorder %s32_s30, %s32_s30 }
  0x1b   :  { %p661_p11 = scmp.ne.s32.totalorder %s32_s30, %s660_s12  ;;  %p666_p13 = scmp.lt.s32.totalorder %s660_s12, %s660_s12 }
  0x1d   :  { %p667_p0 = por %p666_p13, %p665_p12 }
  0x1f   :  { %p668_p1 = pnand %p667_p0, %p661_p11 }
  0x21   :  { %671 = shalt.err (!%p668_p1)
}
  0x22   :  { %37 = dma.hbm_to_vmem [thread:$0]  %s960_s2, 512, %s32_s30, [#allocation7], %s741_s25, %s741_s25, %s742_s26  }
  0x23   :  { %714 = dma.done.wait [#allocation4], 2048  }
  0x24   :  { %715 = vsyncadd [#allocation4], 4294965248 }
  0x25   :  { %716 = dma.done.wait [#allocation7], 512  }
  0x26   :  { %717 = vsyncadd [#allocation7], 4294966784  ;;  %v744_v0 = vmov 0   ;;  %v745_v1 = vmov 1   ;;  %v805_v2 = vld [vmem:[#allocation6] sm:$0xff]  ;;  %v807_v3 = vld [vmem:[#allocation6 + $0x8] sm:$0xff] }
  0x27   :  { %568 = vset.pattern.permute.xlu1 %v744_v0  ;;  %569 = vset.pattern.permute.xlu0 %v745_v1  ;;  %v809_v4 = vld [vmem:[#allocation6 + $0x10] sm:$0xff]  ;;  %v811_v5 = vld [vmem:[#allocation6 + $0x18] sm:$0xff]  ;;  %v50_v6 = vld [vmem:[%s961_s3] sm:$0xff]  ;;  %s746_s2 = smov 127   ;;  %v747_v8 = vmov 2  }
  0x28   :  { %54 = vrot.lane.b32.xlu0 %v50_v6, %s746_s2  ;;  %77 = vperm.xlu1 %568, %v50_v6   ;;  %v51_v7 = vld [vmem:[%s961_s3 + $0x8] sm:$0xff]  ;;  %v74_v11 = vld [vmem:[#allocation3] sm:$0xff]  ;;  %s843_s3 = smov 1  }
  0x29   :  { %v75_v14 = vld [vmem:[#allocation3 + $0x8] sm:$0xff] }
  0x2c   :  { %56 = vrot.lane.b32.xlu0 %v51_v7, %s746_s2  ;;  %81 = vperm.xlu1 %568, %v51_v7  }
  0x30   :  { %570 = vset.pattern.permute.xlu1 %v745_v1  ;;  %87 = vperm.xlu0 %569, %v50_v6  }
  0x31   :  { %91 = vperm.xlu1 %570, %v51_v7  }
  0x34   :  { %572 = vset.pattern.permute.xlu0 %v747_v8 }
  0x35   :  { %571 = vset.pattern.permute.xlu1 %v747_v8  ;;  %63 = vperm.xlu0 %572, %v51_v7  }
  0x36   :  { %59 = vperm.xlu1 %571, %v50_v6  }
  0x39   :  { %573 = vset.pattern.permute.xlu0 %v745_v1 }
  0x9a   :  { %v55_v9 = vpop.permute.xlu0 %54 }
  0x9b   :  { %67 = vperm.xlu1 %571, %v55_v9  }
  0x9e   :  { %v57_v10 = vpop.permute.xlu0 %56 }
  0x9f   :  { %71 = vperm.xlu1 %571, %v57_v10  }
  0xa7   :  { %v78_v12 = vpop.permute.xlu1 %77 }
  0xa8   :  { %v84_v13 = vadd.f32 %v78_v12, %v74_v11  }
  0xaa   :  { %94 = vst [vmem:[#allocation8] sm:$0xff] %v84_v13 }
  0xab   :  { %v82_v15 = vpop.permute.xlu1 %81 }
  0xac   :  { %v85_v16 = vadd.f32 %v82_v15, %v75_v14  }
  0xae   :  { %95 = vst [vmem:[#allocation8 + $0x8] sm:$0xff] %v85_v16 }
  0xaf   :  { %v819_v17 = vpop.permute.xlu0 %87  }
  0xb0   :  { %v821_v18 = vpop.permute.xlu1 %91   ;;  %97 = vst [vmem:[#allocation2 + $0x70] sm:$0xff] %v819_v17  ;;  %v964_v24 = vmov %v819_v17 }
  0xb1   :  { %98 = vst [vmem:[#allocation2 + $0x78] sm:$0xff] %v821_v18  ;;  %v963_v23 = vmov %v821_v18 }
  0xb4   :  { %v825_v19 = vpop.permute.xlu0 %63 }
  0xb5   :  { %v827_v20 = vpop.permute.xlu1 %59 }
 0x11a   :  { %v829_v21 = vpop.permute.xlu1 %67 }
 0x11e   :  { %v831_v22 = vpop.permute.xlu1 %71 }
 0x11f LB: > { %v126_v25 = vmax.f32 %v734_v13, %v730_v16  ;;  %s109_s18 = ssub.s32 8, %s738_s3  ;;  %vm154_vm0 = vcmask 261120   ;;  %s118_s23 = scalar_lea.vmem %s959_s1, %s738_s3  ;;  %v269_v61 = vlaneseq  ;;  %v748_v8 = vmov 0   ;;  %s738_s3 = sphi %s843_s3, %s104_s3   ;;  %v734_v13 = vphi %v84_v13, %v966_v13   ;;  %v730_v16 = vphi %v85_v16, %v965_v16   ;;  %v726_v24 = vphi %v964_v24, %v287_v24   ;;  %v722_v23 = vphi %v963_v23, %v288_v23  }
 0x120   : > { %s478_s19 = sshll.u32 %s109_s18, 4  ;;  %500 = vmatprep.mubr.msk.f32.mxu0 %vm154_vm0, %v805_v2  ;;  %503 = vmatprep.mubr.msk.f32.mxu1 %vm154_vm0, %v809_v4  ;;  %s121_s28 = scalar_lea.vmem %s959_s1, %s109_s18  ;;  %v119_v0 = vld [vmem:[%s118_s23] sm:$0x1] }
 0x121   : > { %v127_v26 = vrot.slane %v126_v25, 4  ;;  %s115_s20 = scalar_lea.vmem [#allocation3], %s478_s19  ;;  %v122_v1 = vld [vmem:[%s121_s28] sm:$0x1]  ;;  %v270_v6 = vshrl.u32 %v269_v61, 7  ;;  %vm120_vm1 = vcmp.gt.f32.partialorder %v119_v0, 0.0 }
 0x122   : > { %v116_v27 = vld [vmem:[%s115_s20] sm:$0xff]  ;;  %v117_v28 = vld [vmem:[%s115_s20 + $0x8] sm:$0xff]  ;;  %vm123_vm2 = vcmp.gt.f32.partialorder %v122_v1, 0.0  ;;  %s477_s29 = sshll.u32 %s738_s3, 4  ;;  %v268_v9 = vsel %vm120_vm1, 1, %v748_v8  ;;  %s289_s30 = ssub.s32 7, %s738_s3 }
 0x123   : > { %v128_v29 = vmax.f32 %v126_v25, %v127_v26  ;;  %v124_v30 = vadd.f32 %v726_v24, %v116_v27  ;;  %v125_v31 = vadd.f32 %v722_v23, %v117_v28  ;;  %v271_v7 = vsub.s32 0, %v270_v6  ;;  %s111_s5 = scalar_lea.vmem [#allocation3], %s477_s29  ;;  %s483_s6 = sshll.u32 %s289_s30, 4 }
 0x124   : > { %v281_v10 = vsel %vm123_vm2, 1, %v748_v8  ;;  %s276_s7 = scalar_lea.vmem [#allocation8], %s477_s29  ;;  %s291_s8 = scalar_lea.vmem [#allocation2], %s483_s6 }
 0x125   : > { %v129_v32 = vrot.slane %v128_v29, 2  ;;  %v134_v33 = vmax.f32 %v124_v30, %v125_v31  ;;  %v272_v25 = vrot.slane %v268_v9, %v271_v7  ;;  %v285_v27 = vrot.slane %v281_v10, %v271_v7  ;;  %s104_s3 = sadd.s32 1, %s738_s3  }
 0x126   : > { %p101_p2 = scmp.ge.s32.totalorder %s104_s3, 8  }
 0x127   : > { %v130_v34 = vmax.f32 %v128_v29, %v129_v32  ;;  %v135_v35 = vrot.slane %v134_v33, 4  ;;  %vm273_vm3 = vcmp.eq.s32.totalorder %v272_v25, 1  ;;  %vm286_vm4 = vcmp.eq.s32.totalorder %v285_v27, 1  ;;  %s749_s1 = smov (%p101_p2), [#allocation8]  }
 0x128   :  { %s437_s9 = sshll.u32 (%p101_p2), %s749_s1, 4  ;;  %s438_s9 = int_to_ptr.vmem [resolvable:$true] %s437_s9 }
 0x129   : > { %v131_v36 = vrot.slane %v130_v34, 1  ;;  %v136_v37 = vmax.f32 %v134_v33, %v135_v35  ;;  %v112_v35 = vld [vmem:[%s111_s5] sm:$0xff]  ;;  %s672_s10 = scalar_lea.vmem (%p101_p2), %s438_s9, 2048  ;;  %p677_p4 = scmp.lt.s32.totalorder (%p101_p2), %s438_s9, %s438_s9 }
 0x12a   :  { %p673_p3 = scmp.ne.s32.totalorder (%p101_p2), %s438_s9, %s672_s10  ;;  %p678_p5 = scmp.lt.s32.totalorder (%p101_p2), %s672_s10, %s672_s10 }
 0x12b   : > { %v132_v38 = vmax.f32 %v130_v34, %v131_v36  ;;  %v137_v39 = vrot.slane %v136_v37, 2 }
 0x12c   :  { %p679_p6 = por (%p101_p2), %p678_p5, %p677_p4 }
 0x12d   : > { %v871_v40 = vmax.f32 %v132_v38, -1e+30  ;;  %v138_v41 = vmax.f32 %v136_v37, %v137_v39 }
 0x12e   :  { %p680_p7 = pnand (%p101_p2), %p679_p6, %p673_p3 }
 0x12f   : > { %v142_v42 = vsub.f32 %v734_v13, %v871_v40  ;;  %v143_v43 = vsub.f32 %v730_v16, %v871_v40  ;;  %v139_v44 = vrot.slane %v138_v41, 1 }
 0x131   : > { %v144_v45 = vmul.f32 1.442695, %v142_v42  ;;  %v146_v46 = vmul.f32 1.442695, %v143_v43  ;;  %v140_v47 = vmax.f32 %v138_v41, %v139_v44 }
 0x133   : > { %574 = vpow2.f32 %v144_v45  ;;  %v877_v48 = vmax.f32 %v140_v47, -1e+30 }
 0x134   : > { %576 = vpow2.f32 %v146_v46 }
 0x135   : > { %v148_v49 = vsub.f32 %v124_v30, %v877_v48  ;;  %v149_v50 = vsub.f32 %v125_v31, %v877_v48  ;;  %v113_v31 = vld [vmem:[%s111_s5 + $0x8] sm:$0xff] }
 0x137   : > { %v150_v51 = vmul.f32 1.442695, %v148_v49  ;;  %v152_v52 = vmul.f32 1.442695, %v149_v50 }
 0x139   : > { %578 = vpow2.f32 %v150_v51 }
 0x13a   : > { %580 = vpow2.f32 %v152_v52 }
 0x13d   : > { %v575_v53 = vpop.eup %574 }
 0x13e   : > { %v577_v54 = vpop.eup %576 }
 0x13f   : > { %v506_v55 = vpack.c.bf16 %v577_v54, %v575_v53 }
 0x141   : > { %507 = vmatprep.subr.bf16.mxu0 %v506_v55  ;;  %514 = vmatprep.subr.bf16.mxu1 %v506_v55 }
 0x142   : > { %509 = vmatpush3.bf16.msra.mxu0 %v506_v55  ;;  %516 = vmatpush3.bf16.msra.mxu1 %v506_v55 }
 0x143   : > { %v579_v56 = vpop.eup %578 }
 0x144   : > { %v581_v57 = vpop.eup %580 }
 0x145   : > { %v510_v58 = vpack.c.bf16 %v581_v57, %v579_v56 }
 0x147   : > { %511 = vmatprep.subr.bf16.mxu0 %v510_v58  ;;  %515 = vmatprep.subr.bf16.mxu1 %v510_v58 }
 0x148   : > { %513 = vmatpush3.bf16.msra.mxu0 %v510_v58  ;;  %517 = vmatpush3.bf16.msra.mxu1 %v510_v58 }
 0x14b   : > { %501 = vmatmul.mubr.msk.f32.vlgmr.msra.gmra.mrb[0].mxu0 %vm154_vm0, %v807_v3  ;;  %504 = vmatmul.mubr.msk.f32.vlgmr.msra.gmra.mrb[0].mxu1 %vm154_vm0, %v811_v5 }
 0x21e   : > { %v502_v59 = vpop.f32.mrb[0].mxu0  ;;  %v505_v60 = vpop.f32.mrb[0].mxu1 }
 0x21f   : > { %582 = vlog2.f32 %v502_v59  ;;  %v233_v62 = vpop.f32.mrb[1].mxu0  ;;  %v243_v63 = vpop.f32.mrb[1].mxu1 }
 0x220   : > { %584 = vlog2.f32 %v233_v62 }
 0x221   : > { %586 = vlog2.f32 %v505_v60 }
 0x222   : > { %588 = vlog2.f32 %v243_v63 }
 0x229   : > { %v583_v11 = vpop.eup %582 }
 0x22a   : > { %v585_v12 = vpop.eup %584  ;;  %v255_v14 = vmul.f32 0.6931472, %v583_v11 }
 0x22b   : > { %v587_v15 = vpop.eup %586  ;;  %v253_v26 = vmul.f32 0.6931472, %v585_v12 }
 0x22c   : > { %v589_v28 = vpop.eup %588  ;;  %v261_v29 = vadd.f32 %v255_v14, %v825_v19  ;;  %v259_v30 = vmul.f32 0.6931472, %v587_v15 }
 0x22d   : > { %v260_v32 = vadd.f32 %v253_v26, %v827_v20  ;;  %v257_v33 = vmul.f32 0.6931472, %v589_v28 }
 0x22e   : > { %v265_v34 = vadd.f32 %v261_v29, %v871_v40  ;;  %v263_v36 = vadd.f32 %v259_v30, %v831_v22  ;;  %103 = sbr.rel (!%p101_p2) target bundleno = 287 (0x11f), region = 58 }
 0x22f   : > { %v264_v37 = vadd.f32 %v260_v32, %v871_v40  ;;  %v262_v38 = vadd.f32 %v257_v33, %v829_v21 }
 0x230   : > { %v267_v39 = vadd.f32 %v265_v34, %v113_v31  ;;  %v280_v41 = vadd.f32 %v263_v36, %v877_v48 }
 0x231   : > { %v266_v42 = vadd.f32 %v264_v37, %v112_v35  ;;  %v279_v43 = vadd.f32 %v262_v38, %v877_v48 }
 0x232   : > { %v275_v44 = vsel %vm273_vm3, %v267_v39, %v730_v16   ;;  %v288_v23 = vsel %vm286_vm4, %v280_v41, %v722_v23  }
 0x233   : > { %278 = vst [vmem:[%s276_s7 + $0x8] sm:$0xff] %v275_v44  ;;  %v274_v45 = vsel %vm273_vm3, %v266_v42, %v734_v13   ;;  %293 = vst [vmem:[%s291_s8 + $0x8] sm:$0xff] %v288_v23  ;;  %v287_v24 = vsel %vm286_vm4, %v279_v43, %v726_v24   ;;  %v965_v16 = vmov %v275_v44  ;;  %v295_v40 = vadd.f32 (%p101_p2), %v275_v44, %v821_v18 }
 0x234   : > { %277 = vst [vmem:[%s276_s7] sm:$0xff] %v274_v45  ;;  %292 = vst [vmem:[%s291_s8] sm:$0xff] %v287_v24  ;;  %v966_v13 = vmov %v274_v45 }
 0x235   :  { %v294_v13 = vadd.f32 %v274_v45, %v819_v17 }
 0x237   :  { %v296_v46 = vmax.f32 %v294_v13, %v295_v40 }
 0x239   :  { %v297_v47 = vrot.slane %v296_v46, 4 }
 0x23b   :  { %v298_v48 = vmax.f32 %v296_v46, %v297_v47  ;;  %v320_v19 = vld [vmem:[#allocation8] sm:$0xff]  ;;  %v321_v21 = vld [vmem:[#allocation8 + $0x8] sm:$0xff]  ;;  %v322_v23 = vld [vmem:[#allocation8 + $0x10] sm:$0xff] }
 0x23c   :  { %v336_v20 = vld [vmem:[#allocation2] sm:$0xff]  ;;  %v337_v22 = vld [vmem:[#allocation2 + $0x8] sm:$0xff]  ;;  %v338_v24 = vld [vmem:[#allocation2 + $0x10] sm:$0xff] }
 0x23d   :  { %v299_v49 = vrot.slane %v298_v48, 2  ;;  %v323_v60 = vld [vmem:[#allocation8 + $0x18] sm:$0xff]  ;;  %v324_v62 = vld [vmem:[#allocation8 + $0x20] sm:$0xff]  ;;  %v325_v0 = vld [vmem:[#allocation8 + $0x28] sm:$0xff]  ;;  %v352_v7 = vadd.f32 %v336_v20, %v320_v19  ;;  %v353_v12 = vadd.f32 %v337_v22, %v321_v21  ;;  %v354_v14 = vadd.f32 %v338_v24, %v322_v23 }
 0x23e   :  { %v339_v61 = vld [vmem:[#allocation2 + $0x18] sm:$0xff]  ;;  %v340_v63 = vld [vmem:[#allocation2 + $0x20] sm:$0xff]  ;;  %v341_v1 = vld [vmem:[#allocation2 + $0x28] sm:$0xff] }
 0x23f   :  { %v300_v50 = vmax.f32 %v298_v48, %v299_v49  ;;  %v326_v8 = vld [vmem:[#allocation8 + $0x30] sm:$0xff]  ;;  %v327_v10 = vld [vmem:[#allocation8 + $0x38] sm:$0xff]  ;;  %v355_v15 = vadd.f32 %v339_v61, %v323_v60  ;;  %v328_v26 = vld [vmem:[#allocation8 + $0x40] sm:$0xff]  ;;  %v356_v28 = vadd.f32 %v340_v63, %v324_v62  ;;  %v357_v29 = vadd.f32 %v341_v1, %v325_v0 }
 0x240   :  { %v342_v9 = vld [vmem:[#allocation2 + $0x30] sm:$0xff]  ;;  %v343_v25 = vld [vmem:[#allocation2 + $0x38] sm:$0xff]  ;;  %v344_v27 = vld [vmem:[#allocation2 + $0x40] sm:$0xff] }
 0x241   :  { %v301_v51 = vrot.slane %v300_v50, 1  ;;  %v329_v30 = vld [vmem:[#allocation8 + $0x48] sm:$0xff]  ;;  %v358_v32 = vadd.f32 %v342_v9, %v326_v8  ;;  %v330_v34 = vld [vmem:[#allocation8 + $0x50] sm:$0xff]  ;;  %v359_v36 = vadd.f32 %v343_v25, %v327_v10  ;;  %v360_v37 = vadd.f32 %v344_v27, %v328_v26  ;;  %v331_v43 = vld [vmem:[#allocation8 + $0x58] sm:$0xff] }
 0x242   :  { %v345_v33 = vld [vmem:[#allocation2 + $0x48] sm:$0xff]  ;;  %v346_v35 = vld [vmem:[#allocation2 + $0x50] sm:$0xff]  ;;  %v347_v44 = vld [vmem:[#allocation2 + $0x58] sm:$0xff] }
 0x243   :  { %v302_v52 = vmax.f32 %v300_v50, %v301_v51  ;;  %v332_v45 = vld [vmem:[#allocation8 + $0x60] sm:$0xff]  ;;  %v361_v46 = vadd.f32 %v345_v33, %v329_v30  ;;  %v362_v47 = vadd.f32 %v346_v35, %v330_v34  ;;  %v333_v49 = vld [vmem:[#allocation8 + $0x68] sm:$0xff] }
 0x244   :  { %v348_v48 = vld [vmem:[#allocation2 + $0x60] sm:$0xff]  ;;  %v349_v50 = vld [vmem:[#allocation2 + $0x68] sm:$0xff] }
 0x245   :  { %v303_v53 = vmax.f32 %v302_v52, -1e+30  ;;  %v365_v19 = vadd.f32 %v349_v50, %v333_v49 }
 0x247   :  { %v304_v54 = vsub.f32 %v294_v13, %v303_v53  ;;  %v305_v55 = vsub.f32 %v295_v40, %v303_v53 }
 0x249   :  { %v306_v56 = vmul.f32 1.442695, %v304_v54  ;;  %v308_v57 = vmul.f32 1.442695, %v305_v55 }
 0x24b   :  { %590 = vpow2.f32 %v306_v56 }
 0x24c   :  { %592 = vpow2.f32 %v308_v57  ;;  %v363_v57 = vadd.f32 %v347_v44, %v331_v43 }
 0x255   :  { %v591_v58 = vpop.eup %590 }
 0x256   :  { %v593_v59 = vpop.eup %592 }
 0x257   :  { %v310_v2 = vadd.f32 %v593_v59, %v591_v58  ;;  %v334_v58 = vld [vmem:[#allocation8 + $0x70] sm:$0xff] }
 0x258   :  { %v350_v59 = vld [vmem:[#allocation2 + $0x70] sm:$0xff] }
 0x259   :  { %v311_v3 = vrot.slane %v310_v2, 4  ;;  %v366_v22 = vadd.f32 %v350_v59, %v334_v58 }
 0x25b   :  { %v312_v4 = vadd.f32 %v311_v3, %v310_v2 }
 0x25d   :  { %v313_v5 = vrot.slane %v312_v4, 2 }
 0x25f   :  { %v314_v16 = vadd.f32 %v313_v5, %v312_v4  ;;  %v364_v4 = vadd.f32 %v348_v48, %v332_v45  ;;  %v335_v5 = vld [vmem:[#allocation8 + $0x78] sm:$0xff] }
 0x261   :  { %v315_v17 = vrot.slane %v314_v16, 1 }
 0x263   :  { %v316_v18 = vadd.f32 %v315_v17, %v314_v16  ;;  %v351_v16 = vld [vmem:[#allocation2 + $0x78] sm:$0xff] }
 0x264   :  { %v367_v60 = vadd.f32 %v351_v16, %v335_v5 }
 0x265   :  { %594 = vlog2.f32 %v316_v18 }
 0x26f   :  { %v595_v6 = vpop.eup %594 }
 0x270   :  { %v318_v11 = vmul.f32 0.6931472, %v595_v6 }
 0x272   :  { %v925_v31 = vadd.f32 %v318_v11, %v303_v53 }
 0x274   :  { %v368_v38 = vsub.f32 %v352_v7, %v925_v31  ;;  %v369_v39 = vsub.f32 %v353_v12, %v925_v31  ;;  %v370_v41 = vsub.f32 %v354_v14, %v925_v31  ;;  %v371_v42 = vsub.f32 %v355_v15, %v925_v31 }
 0x275   :  { %v372_v13 = vsub.f32 %v356_v28, %v925_v31  ;;  %v373_v40 = vsub.f32 %v357_v29, %v925_v31  ;;  %v374_v54 = vsub.f32 %v358_v32, %v925_v31  ;;  %v375_v56 = vsub.f32 %v359_v36, %v925_v31 }
 0x276   :  { %v384_v51 = vmul.f32 1.442695, %v368_v38  ;;  %v386_v52 = vmul.f32 1.442695, %v369_v39  ;;  %v388_v53 = vmul.f32 1.442695, %v370_v41  ;;  %v376_v3 = vsub.f32 %v360_v37, %v925_v31 }
 0x277   :  { %v390_v55 = vmul.f32 1.442695, %v371_v42  ;;  %v392_v2 = vmul.f32 1.442695, %v372_v13  ;;  %v394_v17 = vmul.f32 1.442695, %v373_v40  ;;  %v377_v18 = vsub.f32 %v361_v46, %v925_v31 }
 0x278   :  { %596 = vpow2.f32 %v384_v51  ;;  %v396_v20 = vmul.f32 1.442695, %v374_v54  ;;  %v378_v21 = vsub.f32 %v362_v47, %v925_v31  ;;  %v398_v23 = vmul.f32 1.442695, %v375_v56 }
 0x279   :  { %598 = vpow2.f32 %v386_v52  ;;  %v379_v24 = vsub.f32 %v363_v57, %v925_v31  ;;  %v400_v61 = vmul.f32 1.442695, %v376_v3  ;;  %v380_v62 = vsub.f32 %v364_v4, %v925_v31 }
 0x27a   :  { %600 = vpow2.f32 %v388_v53  ;;  %v402_v63 = vmul.f32 1.442695, %v377_v18  ;;  %v381_v0 = vsub.f32 %v365_v19, %v925_v31  ;;  %v404_v1 = vmul.f32 1.442695, %v378_v21 }
 0x27b   :  { %602 = vpow2.f32 %v390_v55  ;;  %v382_v6 = vsub.f32 %v366_v22, %v925_v31  ;;  %v406_v7 = vmul.f32 1.442695, %v379_v24  ;;  %v383_v8 = vsub.f32 %v367_v60, %v925_v31 }
 0x27c   :  { %604 = vpow2.f32 %v392_v2  ;;  %v408_v9 = vmul.f32 1.442695, %v380_v62  ;;  %v410_v10 = vmul.f32 1.442695, %v381_v0 }
 0x27d   :  { %606 = vpow2.f32 %v394_v17  ;;  %v412_v12 = vmul.f32 1.442695, %v382_v6  ;;  %v414_v15 = vmul.f32 1.442695, %v383_v8 }
 0x27e   :  { %608 = vpow2.f32 %v396_v20 }
 0x27f   :  { %610 = vpow2.f32 %v398_v23 }
 0x280   :  { %612 = vpow2.f32 %v400_v61 }
 0x281   :  { %614 = vpow2.f32 %v402_v63 }
 0x282   :  { %v597_v11 = vpop.eup %596  ;;  %616 = vpow2.f32 %v404_v1 }
 0x283   :  { %v599_v14 = vpop.eup %598  ;;  %416 = vst [vmem:[#allocation8] sm:$0xff] %v597_v11  ;;  %618 = vpow2.f32 %v406_v7 }
 0x284   :  { %v601_v25 = vpop.eup %600  ;;  %417 = vst [vmem:[#allocation8 + $0x8] sm:$0xff] %v599_v14  ;;  %620 = vpow2.f32 %v408_v9 }
 0x285   :  { %v603_v26 = vpop.eup %602  ;;  %418 = vst [vmem:[#allocation8 + $0x10] sm:$0xff] %v601_v25  ;;  %622 = vpow2.f32 %v410_v10 }
 0x286   :  { %v605_v27 = vpop.eup %604  ;;  %419 = vst [vmem:[#allocation8 + $0x18] sm:$0xff] %v603_v26  ;;  %624 = vpow2.f32 %v412_v12 }
 0x287   :  { %v607_v28 = vpop.eup %606  ;;  %420 = vst [vmem:[#allocation8 + $0x20] sm:$0xff] %v605_v27  ;;  %626 = vpow2.f32 %v414_v15 }
 0x288   :  { %v609_v29 = vpop.eup %608  ;;  %421 = vst [vmem:[#allocation8 + $0x28] sm:$0xff] %v607_v28 }
 0x289   :  { %v611_v30 = vpop.eup %610  ;;  %422 = vst [vmem:[#allocation8 + $0x30] sm:$0xff] %v609_v29 }
 0x28a   :  { %v613_v31 = vpop.eup %612  ;;  %423 = vst [vmem:[#allocation8 + $0x38] sm:$0xff] %v611_v30 }
 0x28b   :  { %v615_v32 = vpop.eup %614  ;;  %424 = vst [vmem:[#allocation8 + $0x40] sm:$0xff] %v613_v31 }
 0x28c   :  { %v617_v33 = vpop.eup %616  ;;  %425 = vst [vmem:[#allocation8 + $0x48] sm:$0xff] %v615_v32 }
 0x28d   :  { %v619_v34 = vpop.eup %618  ;;  %426 = vst [vmem:[#allocation8 + $0x50] sm:$0xff] %v617_v33 }
 0x28e   :  { %v621_v35 = vpop.eup %620  ;;  %427 = vst [vmem:[#allocation8 + $0x58] sm:$0xff] %v619_v34 }
 0x28f   :  { %v623_v36 = vpop.eup %622  ;;  %428 = vst [vmem:[#allocation8 + $0x60] sm:$0xff] %v621_v35 }
 0x290   :  { %v625_v37 = vpop.eup %624  ;;  %429 = vst [vmem:[#allocation8 + $0x68] sm:$0xff] %v623_v36 }
 0x291   :  { %v627_v38 = vpop.eup %626  ;;  %430 = vst [vmem:[#allocation8 + $0x70] sm:$0xff] %v625_v37 }
 0x292   :  { %431 = vst [vmem:[#allocation8 + $0x78] sm:$0xff] %v627_v38 }
 0x293   :  { %683 = shalt.err (!%p680_p7)
}
 0x294   :  { %s684_s0 = scalar_lea.hbm %s962_s4, 2048 }
 0x295   :  { %p685_p8 = scmp.ne.s32.totalorder %s962_s4, %s684_s0  ;;  %p688_p9 = scmp.lt.u32.totalorder %s684_s0, %s962_s4 }
 0x297   :  { %p690_p10 = pnand %p688_p9, %p685_p8 }
 0x299   :  { %693 = shalt.err (!%p690_p10)
}
 0x29a   :  { %443 = dma.vmem_to_hbm [thread:$0]  %s438_s9, 2048, %s962_s4, [#allocation5], %s741_s25, %s741_s25, %s742_s26  }
 0x29b   :  { %718 = dma.done.wait [#allocation5], 2048  }
 0x29c   :  { %719 = vsyncadd [#allocation5], 4294965248 }
 0x29d   :  { %447 = vsyncpa [#allocation4], 1 }
 0x29e   :  { %448 = vsyncpa [#allocation7], 1 }
 0x29f   :  { %449 = vsyncpa [#allocation5], 1 }

</bundles_post_ra>
